<compile_context>
chip_gen: v6e
topology: v6e:2x2x1
jax: 0.10.0
libtpu: 0.0.40
codegen_flags: <defaults>
</compile_context>

<pallas_src>
import jax
import jax.numpy as jnp
from jax.experimental import pallas as pl
from jax.experimental.pallas import tpu as pltpu

LANES = 128           # vreg lane width; samples go on lanes
MAX_TILE_ROWS = 1024  # 1024 x 128 f32 = 512 KiB per input tile (safe on v5e/v6e/v7x)


def _mlp_kernel(x0_ref, x1_ref, x2_ref, w1_ref, b1_ref, w2_ref, b2_ref, o_ref):
    """VPU-only MLP over a lane-dense tile of samples.

    x*_ref : (tile_rows, 128) f32, VMEM   (the three input features)
    w1_ref : (3, 8)  f32, SMEM
    b1_ref : (8,)    f32, SMEM
    w2_ref : (8, 1)  f32, SMEM
    b2_ref : (1,)    f32, SMEM
    o_ref  : (tile_rows, 128) f32, VMEM
    """
    x0 = x0_ref[...]
    x1 = x1_ref[...]
    x2 = x2_ref[...]
    acc = jnp.zeros_like(x0)
    # Static unroll over the 8 hidden units: ~64 VPU FMAs + 8 maxima per tile.
    for j in range(8):
        h = w1_ref[0, j] * x0 + w1_ref[1, j] * x1 + w1_ref[2, j] * x2 + b1_ref[j]
        h = jnp.maximum(h, 0.0)          # ReLU
        acc = acc + w2_ref[j, 0] * h     # second Linear as 8-way weighted sum
    o_ref[...] = acc + b2_ref[0]


def ensemble_forward(data, params):
    """data: (cah, hydroS, dasp), each shape (N,). Returns (N, 1) float32,
    matching EnsembleModel.forward semantics."""
    cah, hydroS, dasp = data
    w1, b1, w2, b2 = params
    n = cah.shape[0]

    # Lane-dense view: (N,) -> (rows, 128). Pick the tile so the grid divides evenly
    # and the block shape is legal (either full-array or multiple of (8,128)).
    rows = -(-n // LANES)
    if rows <= MAX_TILE_ROWS:
        tile_rows = max(rows, 1)
        rows_pad = tile_rows                      # single grid step, block == full array
    else:
        tile_rows = MAX_TILE_ROWS                 # multiple of 8 -> legal block
        rows_pad = -(-rows // tile_rows) * tile_rows
    n_pad = rows_pad * LANES

    def prep(x):
        x = x.astype(jnp.float32).reshape(-1)
        if n_pad != n:
            x = jnp.pad(x, (0, n_pad - n))        # zero-pad tail; sliced off below
        return x.reshape(rows_pad, LANES)         # free reshape (contiguous)

    x0, x1, x2 = prep(cah), prep(hydroS), prep(dasp)
    grid = (rows_pad // tile_rows,)

    act_spec = pl.BlockSpec((tile_rows, LANES), lambda i: (i, 0))
    smem = pltpu.MemorySpace.SMEM

    out2d = pl.pallas_call(
        _mlp_kernel,
        out_shape=jax.ShapeDtypeStruct((rows_pad, LANES), jnp.float32),
        grid_spec=pltpu.PrefetchScalarGridSpec(
            num_scalar_prefetch=0,
            grid=grid,
            in_specs=[
                act_spec,                              # x0 (cah)
                act_spec,                              # x1 (hydroS)
                act_spec,                              # x2 (dasp)
                pl.BlockSpec(memory_space=smem),       # w1 (3,8)  resident scalars
                pl.BlockSpec(memory_space=smem),       # b1 (8,)
                pl.BlockSpec(memory_space=smem),       # w2 (8,1)
                pl.BlockSpec(memory_space=smem),       # b2 (1,)
            ],
            out_specs=act_spec,
        ),
        compiler_params=pltpu.CompilerParams(
            dimension_semantics=("parallel",)),        # v7x megacore sharding; no-op on v5e/v6e
    )(x0, x1, x2,
      w1.astype(jnp.float32), b1.astype(jnp.float32),
      w2.astype(jnp.float32), b2.astype(jnp.float32))

    return out2d.reshape(n_pad)[:n].reshape(n, 1)


def init_params(key):
    """Deterministic init mimicking nn.Linear defaults (uniform +-1/sqrt(fan_in))."""
    k1, k2, k3, k4 = jax.random.split(key, 4)
    lim1 = 1.0 / jnp.sqrt(3.0)
    lim2 = 1.0 / jnp.sqrt(8.0)
    w1 = jax.random.uniform(k1, (3, 8), jnp.float32, -lim1, lim1)
    b1 = jax.random.uniform(k2, (8,), jnp.float32, -lim1, lim1)
    w2 = jax.random.uniform(k3, (8, 1), jnp.float32, -lim2, lim2)
    b2 = jax.random.uniform(k4, (1,), jnp.float32, -lim2, lim2)
    return w1, b1, w2, b2


if __name__ == "__main__":
    key = jax.random.PRNGKey(0)
    kp, kc, kh, kd = jax.random.split(key, 4)

    params = init_params(kp)

    N = 300  # small batch, not a multiple of 128: exercises the padded-tail path
    cah = jax.random.normal(kc, (N,), jnp.float32)
    hydroS = jax.random.normal(kh, (N,), jnp.float32)
    dasp = jax.random.normal(kd, (N,), jnp.float32)

    out = ensemble_forward((cah, hydroS, dasp), params)
    out = jax.block_until_ready(out)

    # sanity check against pure-JAX reference
    concat = jnp.stack([cah, hydroS, dasp], axis=1)
    w1, b1, w2, b2 = params
    ref = jnp.maximum(concat @ w1 + b1, 0.0) @ w2 + b2
    assert out.shape == (N, 1)
    assert jnp.allclose(out, ref, atol=1e-5, rtol=1e-5), "mismatch vs reference"

    print("KERNEL_OK")
</pallas_src>

<mosaic_0001>
module attributes {stable_mosaic.version = 11 : i64} {
  func.func @_mlp_kernel(%arg0: i32, %arg1: memref<3x128xf32, #tpu.memory_space<vmem>>, %arg2: memref<3x128xf32, #tpu.memory_space<vmem>>, %arg3: memref<3x128xf32, #tpu.memory_space<vmem>>, %arg4: memref<3x8xf32, #tpu.memory_space<smem>>, %arg5: memref<8xf32, #tpu.memory_space<smem>>, %arg6: memref<8x1xf32, #tpu.memory_space<smem>>, %arg7: memref<1xf32, #tpu.memory_space<smem>>, %arg8: memref<3x128xf32, #tpu.memory_space<vmem>>) attributes {dimension_semantics = [#tpu.dimension_semantics<parallel>], iteration_bounds = array<i64: 1>, scalar_prefetch = 0 : i64, scratch_operands = 0 : i64, tpu.core_type = #tpu.core_type<tc>, window_params = [{transform_indices = @transform_0, window_bounds = array<i64: 3, 128>}, {transform_indices = @transform_1, window_bounds = array<i64: 3, 128>}, {transform_indices = @transform_2, window_bounds = array<i64: 3, 128>}, {transform_indices = @transform_3, window_bounds = array<i64: 3, 8>}, {transform_indices = @transform_4, window_bounds = array<i64: 8>}, {transform_indices = @transform_5, window_bounds = array<i64: 8, 1>}, {transform_indices = @transform_6, window_bounds = array<i64: 1>}, {transform_indices = @transform_7, window_bounds = array<i64: 3, 128>}]} {
    %c0 = arith.constant 0 : index
    %c0_0 = arith.constant 0 : index
    %0 = vector.load %arg1[%c0, %c0_0] : memref<3x128xf32, #tpu.memory_space<vmem>>, vector<3x128xf32>
    %c0_1 = arith.constant 0 : index
    %c0_2 = arith.constant 0 : index
    %1 = vector.load %arg2[%c0_1, %c0_2] : memref<3x128xf32, #tpu.memory_space<vmem>>, vector<3x128xf32>
    %c0_3 = arith.constant 0 : index
    %c0_4 = arith.constant 0 : index
    %2 = vector.load %arg3[%c0_3, %c0_4] : memref<3x128xf32, #tpu.memory_space<vmem>>, vector<3x128xf32>
    %cst = arith.constant 0.000000e+00 : f32
    %3 = vector.broadcast %cst : f32 to vector<3x128xf32>
    %c0_5 = arith.constant 0 : index
    %c0_6 = arith.constant 0 : index
    %4 = memref.load %arg4[%c0_5, %c0_6] : memref<3x8xf32, #tpu.memory_space<smem>>
    %5 = vector.broadcast %4 : f32 to vector<3x128xf32>
    %6 = arith.mulf %5, %0 : vector<3x128xf32>
    %c1 = arith.constant 1 : index
    %c0_7 = arith.constant 0 : index
    %7 = memref.load %arg4[%c1, %c0_7] : memref<3x8xf32, #tpu.memory_space<smem>>
    %8 = vector.broadcast %7 : f32 to vector<3x128xf32>
    %9 = arith.mulf %8, %1 : vector<3x128xf32>
    %10 = arith.addf %6, %9 : vector<3x128xf32>
    %c2 = arith.constant 2 : index
    %c0_8 = arith.constant 0 : index
    %11 = memref.load %arg4[%c2, %c0_8] : memref<3x8xf32, #tpu.memory_space<smem>>
    %12 = vector.broadcast %11 : f32 to vector<3x128xf32>
    %13 = arith.mulf %12, %2 : vector<3x128xf32>
    %14 = arith.addf %10, %13 : vector<3x128xf32>
    %c0_9 = arith.constant 0 : index
    %15 = memref.load %arg5[%c0_9] : memref<8xf32, #tpu.memory_space<smem>>
    %16 = vector.broadcast %15 : f32 to vector<3x128xf32>
    %17 = arith.addf %14, %16 : vector<3x128xf32>
    %cst_10 = arith.constant 0.000000e+00 : f32
    %18 = vector.broadcast %cst_10 : f32 to vector<3x128xf32>
    %19 = arith.maximumf %17, %18 : vector<3x128xf32>
    %c0_11 = arith.constant 0 : index
    %c0_12 = arith.constant 0 : index
    %20 = memref.load %arg6[%c0_11, %c0_12] : memref<8x1xf32, #tpu.memory_space<smem>>
    %21 = vector.broadcast %20 : f32 to vector<3x128xf32>
    %22 = arith.mulf %21, %19 : vector<3x128xf32>
    %23 = arith.addf %3, %22 : vector<3x128xf32>
    %c0_13 = arith.constant 0 : index
    %c1_14 = arith.constant 1 : index
    %24 = memref.load %arg4[%c0_13, %c1_14] : memref<3x8xf32, #tpu.memory_space<smem>>
    %25 = vector.broadcast %24 : f32 to vector<3x128xf32>
    %26 = arith.mulf %25, %0 : vector<3x128xf32>
    %c1_15 = arith.constant 1 : index
    %c1_16 = arith.constant 1 : index
    %27 = memref.load %arg4[%c1_15, %c1_16] : memref<3x8xf32, #tpu.memory_space<smem>>
    %28 = vector.broadcast %27 : f32 to vector<3x128xf32>
    %29 = arith.mulf %28, %1 : vector<3x128xf32>
    %30 = arith.addf %26, %29 : vector<3x128xf32>
    %c2_17 = arith.constant 2 : index
    %c1_18 = arith.constant 1 : index
    %31 = memref.load %arg4[%c2_17, %c1_18] : memref<3x8xf32, #tpu.memory_space<smem>>
    %32 = vector.broadcast %31 : f32 to vector<3x128xf32>
    %33 = arith.mulf %32, %2 : vector<3x128xf32>
    %34 = arith.addf %30, %33 : vector<3x128xf32>
    %c1_19 = arith.constant 1 : index
    %35 = memref.load %arg5[%c1_19] : memref<8xf32, #tpu.memory_space<smem>>
    %36 = vector.broadcast %35 : f32 to vector<3x128xf32>
    %37 = arith.addf %34, %36 : vector<3x128xf32>
    %cst_20 = arith.constant 0.000000e+00 : f32
    %38 = vector.broadcast %cst_20 : f32 to vector<3x128xf32>
    %39 = arith.maximumf %37, %38 : vector<3x128xf32>
    %c1_21 = arith.constant 1 : index
    %c0_22 = arith.constant 0 : index
    %40 = memref.load %arg6[%c1_21, %c0_22] : memref<8x1xf32, #tpu.memory_space<smem>>
    %41 = vector.broadcast %40 : f32 to vector<3x128xf32>
    %42 = arith.mulf %41, %39 : vector<3x128xf32>
    %43 = arith.addf %23, %42 : vector<3x128xf32>
    %c0_23 = arith.constant 0 : index
    %c2_24 = arith.constant 2 : index
    %44 = memref.load %arg4[%c0_23, %c2_24] : memref<3x8xf32, #tpu.memory_space<smem>>
    %45 = vector.broadcast %44 : f32 to vector<3x128xf32>
    %46 = arith.mulf %45, %0 : vector<3x128xf32>
    %c1_25 = arith.constant 1 : index
    %c2_26 = arith.constant 2 : index
    %47 = memref.load %arg4[%c1_25, %c2_26] : memref<3x8xf32, #tpu.memory_space<smem>>
    %48 = vector.broadcast %47 : f32 to vector<3x128xf32>
    %49 = arith.mulf %48, %1 : vector<3x128xf32>
    %50 = arith.addf %46, %49 : vector<3x128xf32>
    %c2_27 = arith.constant 2 : index
    %c2_28 = arith.constant 2 : index
    %51 = memref.load %arg4[%c2_27, %c2_28] : memref<3x8xf32, #tpu.memory_space<smem>>
    %52 = vector.broadcast %51 : f32 to vector<3x128xf32>
    %53 = arith.mulf %52, %2 : vector<3x128xf32>
    %54 = arith.addf %50, %53 : vector<3x128xf32>
    %c2_29 = arith.constant 2 : index
    %55 = memref.load %arg5[%c2_29] : memref<8xf32, #tpu.memory_space<smem>>
    %56 = vector.broadcast %55 : f32 to vector<3x128xf32>
    %57 = arith.addf %54, %56 : vector<3x128xf32>
    %cst_30 = arith.constant 0.000000e+00 : f32
    %58 = vector.broadcast %cst_30 : f32 to vector<3x128xf32>
    %59 = arith.maximumf %57, %58 : vector<3x128xf32>
    %c2_31 = arith.constant 2 : index
    %c0_32 = arith.constant 0 : index
    %60 = memref.load %arg6[%c2_31, %c0_32] : memref<8x1xf32, #tpu.memory_space<smem>>
    %61 = vector.broadcast %60 : f32 to vector<3x128xf32>
    %62 = arith.mulf %61, %59 : vector<3x128xf32>
    %63 = arith.addf %43, %62 : vector<3x128xf32>
    %c0_33 = arith.constant 0 : index
    %c3 = arith.constant 3 : index
    %64 = memref.load %arg4[%c0_33, %c3] : memref<3x8xf32, #tpu.memory_space<smem>>
    %65 = vector.broadcast %64 : f32 to vector<3x128xf32>
    %66 = arith.mulf %65, %0 : vector<3x128xf32>
    %c1_34 = arith.constant 1 : index
    %c3_35 = arith.constant 3 : index
    %67 = memref.load %arg4[%c1_34, %c3_35] : memref<3x8xf32, #tpu.memory_space<smem>>
    %68 = vector.broadcast %67 : f32 to vector<3x128xf32>
    %69 = arith.mulf %68, %1 : vector<3x128xf32>
    %70 = arith.addf %66, %69 : vector<3x128xf32>
    %c2_36 = arith.constant 2 : index
    %c3_37 = arith.constant 3 : index
    %71 = memref.load %arg4[%c2_36, %c3_37] : memref<3x8xf32, #tpu.memory_space<smem>>
    %72 = vector.broadcast %71 : f32 to vector<3x128xf32>
    %73 = arith.mulf %72, %2 : vector<3x128xf32>
    %74 = arith.addf %70, %73 : vector<3x128xf32>
    %c3_38 = arith.constant 3 : index
    %75 = memref.load %arg5[%c3_38] : memref<8xf32, #tpu.memory_space<smem>>
    %76 = vector.broadcast %75 : f32 to vector<3x128xf32>
    %77 = arith.addf %74, %76 : vector<3x128xf32>
    %cst_39 = arith.constant 0.000000e+00 : f32
    %78 = vector.broadcast %cst_39 : f32 to vector<3x128xf32>
    %79 = arith.maximumf %77, %78 : vector<3x128xf32>
    %c3_40 = arith.constant 3 : index
    %c0_41 = arith.constant 0 : index
    %80 = memref.load %arg6[%c3_40, %c0_41] : memref<8x1xf32, #tpu.memory_space<smem>>
    %81 = vector.broadcast %80 : f32 to vector<3x128xf32>
    %82 = arith.mulf %81, %79 : vector<3x128xf32>
    %83 = arith.addf %63, %82 : vector<3x128xf32>
    %c0_42 = arith.constant 0 : index
    %c4 = arith.constant 4 : index
    %84 = memref.load %arg4[%c0_42, %c4] : memref<3x8xf32, #tpu.memory_space<smem>>
    %85 = vector.broadcast %84 : f32 to vector<3x128xf32>
    %86 = arith.mulf %85, %0 : vector<3x128xf32>
    %c1_43 = arith.constant 1 : index
    %c4_44 = arith.constant 4 : index
    %87 = memref.load %arg4[%c1_43, %c4_44] : memref<3x8xf32, #tpu.memory_space<smem>>
    %88 = vector.broadcast %87 : f32 to vector<3x128xf32>
    %89 = arith.mulf %88, %1 : vector<3x128xf32>
    %90 = arith.addf %86, %89 : vector<3x128xf32>
    %c2_45 = arith.constant 2 : index
    %c4_46 = arith.constant 4 : index
    %91 = memref.load %arg4[%c2_45, %c4_46] : memref<3x8xf32, #tpu.memory_space<smem>>
    %92 = vector.broadcast %91 : f32 to vector<3x128xf32>
    %93 = arith.mulf %92, %2 : vector<3x128xf32>
    %94 = arith.addf %90, %93 : vector<3x128xf32>
    %c4_47 = arith.constant 4 : index
    %95 = memref.load %arg5[%c4_47] : memref<8xf32, #tpu.memory_space<smem>>
    %96 = vector.broadcast %95 : f32 to vector<3x128xf32>
    %97 = arith.addf %94, %96 : vector<3x128xf32>
    %cst_48 = arith.constant 0.000000e+00 : f32
    %98 = vector.broadcast %cst_48 : f32 to vector<3x128xf32>
    %99 = arith.maximumf %97, %98 : vector<3x128xf32>
    %c4_49 = arith.constant 4 : index
    %c0_50 = arith.constant 0 : index
    %100 = memref.load %arg6[%c4_49, %c0_50] : memref<8x1xf32, #tpu.memory_space<smem>>
    %101 = vector.broadcast %100 : f32 to vector<3x128xf32>
    %102 = arith.mulf %101, %99 : vector<3x128xf32>
    %103 = arith.addf %83, %102 : vector<3x128xf32>
    %c0_51 = arith.constant 0 : index
    %c5 = arith.constant 5 : index
    %104 = memref.load %arg4[%c0_51, %c5] : memref<3x8xf32, #tpu.memory_space<smem>>
    %105 = vector.broadcast %104 : f32 to vector<3x128xf32>
    %106 = arith.mulf %105, %0 : vector<3x128xf32>
    %c1_52 = arith.constant 1 : index
    %c5_53 = arith.constant 5 : index
    %107 = memref.load %arg4[%c1_52, %c5_53] : memref<3x8xf32, #tpu.memory_space<smem>>
    %108 = vector.broadcast %107 : f32 to vector<3x128xf32>
    %109 = arith.mulf %108, %1 : vector<3x128xf32>
    %110 = arith.addf %106, %109 : vector<3x128xf32>
    %c2_54 = arith.constant 2 : index
    %c5_55 = arith.constant 5 : index
    %111 = memref.load %arg4[%c2_54, %c5_55] : memref<3x8xf32, #tpu.memory_space<smem>>
    %112 = vector.broadcast %111 : f32 to vector<3x128xf32>
    %113 = arith.mulf %112, %2 : vector<3x128xf32>
    %114 = arith.addf %110, %113 : vector<3x128xf32>
    %c5_56 = arith.constant 5 : index
    %115 = memref.load %arg5[%c5_56] : memref<8xf32, #tpu.memory_space<smem>>
    %116 = vector.broadcast %115 : f32 to vector<3x128xf32>
    %117 = arith.addf %114, %116 : vector<3x128xf32>
    %cst_57 = arith.constant 0.000000e+00 : f32
    %118 = vector.broadcast %cst_57 : f32 to vector<3x128xf32>
    %119 = arith.maximumf %117, %118 : vector<3x128xf32>
    %c5_58 = arith.constant 5 : index
    %c0_59 = arith.constant 0 : index
    %120 = memref.load %arg6[%c5_58, %c0_59] : memref<8x1xf32, #tpu.memory_space<smem>>
    %121 = vector.broadcast %120 : f32 to vector<3x128xf32>
    %122 = arith.mulf %121, %119 : vector<3x128xf32>
    %123 = arith.addf %103, %122 : vector<3x128xf32>
    %c0_60 = arith.constant 0 : index
    %c6 = arith.constant 6 : index
    %124 = memref.load %arg4[%c0_60, %c6] : memref<3x8xf32, #tpu.memory_space<smem>>
    %125 = vector.broadcast %124 : f32 to vector<3x128xf32>
    %126 = arith.mulf %125, %0 : vector<3x128xf32>
    %c1_61 = arith.constant 1 : index
    %c6_62 = arith.constant 6 : index
    %127 = memref.load %arg4[%c1_61, %c6_62] : memref<3x8xf32, #tpu.memory_space<smem>>
    %128 = vector.broadcast %127 : f32 to vector<3x128xf32>
    %129 = arith.mulf %128, %1 : vector<3x128xf32>
    %130 = arith.addf %126, %129 : vector<3x128xf32>
    %c2_63 = arith.constant 2 : index
    %c6_64 = arith.constant 6 : index
    %131 = memref.load %arg4[%c2_63, %c6_64] : memref<3x8xf32, #tpu.memory_space<smem>>
    %132 = vector.broadcast %131 : f32 to vector<3x128xf32>
    %133 = arith.mulf %132, %2 : vector<3x128xf32>
    %134 = arith.addf %130, %133 : vector<3x128xf32>
    %c6_65 = arith.constant 6 : index
    %135 = memref.load %arg5[%c6_65] : memref<8xf32, #tpu.memory_space<smem>>
    %136 = vector.broadcast %135 : f32 to vector<3x128xf32>
    %137 = arith.addf %134, %136 : vector<3x128xf32>
    %cst_66 = arith.constant 0.000000e+00 : f32
    %138 = vector.broadcast %cst_66 : f32 to vector<3x128xf32>
    %139 = arith.maximumf %137, %138 : vector<3x128xf32>
    %c6_67 = arith.constant 6 : index
    %c0_68 = arith.constant 0 : index
    %140 = memref.load %arg6[%c6_67, %c0_68] : memref<8x1xf32, #tpu.memory_space<smem>>
    %141 = vector.broadcast %140 : f32 to vector<3x128xf32>
    %142 = arith.mulf %141, %139 : vector<3x128xf32>
    %143 = arith.addf %123, %142 : vector<3x128xf32>
    %c0_69 = arith.constant 0 : index
    %c7 = arith.constant 7 : index
    %144 = memref.load %arg4[%c0_69, %c7] : memref<3x8xf32, #tpu.memory_space<smem>>
    %145 = vector.broadcast %144 : f32 to vector<3x128xf32>
    %146 = arith.mulf %145, %0 : vector<3x128xf32>
    %c1_70 = arith.constant 1 : index
    %c7_71 = arith.constant 7 : index
    %147 = memref.load %arg4[%c1_70, %c7_71] : memref<3x8xf32, #tpu.memory_space<smem>>
    %148 = vector.broadcast %147 : f32 to vector<3x128xf32>
    %149 = arith.mulf %148, %1 : vector<3x128xf32>
    %150 = arith.addf %146, %149 : vector<3x128xf32>
    %c2_72 = arith.constant 2 : index
    %c7_73 = arith.constant 7 : index
    %151 = memref.load %arg4[%c2_72, %c7_73] : memref<3x8xf32, #tpu.memory_space<smem>>
    %152 = vector.broadcast %151 : f32 to vector<3x128xf32>
    %153 = arith.mulf %152, %2 : vector<3x128xf32>
    %154 = arith.addf %150, %153 : vector<3x128xf32>
    %c7_74 = arith.constant 7 : index
    %155 = memref.load %arg5[%c7_74] : memref<8xf32, #tpu.memory_space<smem>>
    %156 = vector.broadcast %155 : f32 to vector<3x128xf32>
    %157 = arith.addf %154, %156 : vector<3x128xf32>
    %cst_75 = arith.constant 0.000000e+00 : f32
    %158 = vector.broadcast %cst_75 : f32 to vector<3x128xf32>
    %159 = arith.maximumf %157, %158 : vector<3x128xf32>
    %c7_76 = arith.constant 7 : index
    %c0_77 = arith.constant 0 : index
    %160 = memref.load %arg6[%c7_76, %c0_77] : memref<8x1xf32, #tpu.memory_space<smem>>
    %161 = vector.broadcast %160 : f32 to vector<3x128xf32>
    %162 = arith.mulf %161, %159 : vector<3x128xf32>
    %163 = arith.addf %143, %162 : vector<3x128xf32>
    %c0_78 = arith.constant 0 : index
    %164 = memref.load %arg7[%c0_78] : memref<1xf32, #tpu.memory_space<smem>>
    %165 = vector.broadcast %164 : f32 to vector<3x128xf32>
    %166 = arith.addf %163, %165 : vector<3x128xf32>
    %c0_79 = arith.constant 0 : index
    %c0_80 = arith.constant 0 : index
    %167 = vector.load %arg8[%c0_79, %c0_80] : memref<3x128xf32, #tpu.memory_space<vmem>>, vector<3x128xf32>
    tpu.vector_store %arg8[%c0_79, %c0_80], %166 {strides = array<i32>} : memref<3x128xf32, #tpu.memory_space<vmem>>, vector<3x128xf32>,
    return
  }
  func.func @transform_0(%arg0: i32) -> (i32, i32) {
    %c0_i32 = arith.constant 0 : i32
    %c0_i32_0 = arith.constant 0 : i32
    return %arg0, %c0_i32 : i32, i32
  }
  func.func @transform_1(%arg0: i32) -> (i32, i32) {
    %c0_i32 = arith.constant 0 : i32
    %c0_i32_0 = arith.constant 0 : i32
    return %arg0, %c0_i32 : i32, i32
  }
  func.func @transform_2(%arg0: i32) -> (i32, i32) {
    %c0_i32 = arith.constant 0 : i32
    %c0_i32_0 = arith.constant 0 : i32
    return %arg0, %c0_i32 : i32, i32
  }
  func.func @transform_3(%arg0: i32) -> (i32, i32) {
    %c0_i32 = arith.constant 0 : i32
    %c0_i32_0 = arith.constant 0 : i32
    %c0_i32_1 = arith.constant 0 : i32
    return %c0_i32, %c0_i32_0 : i32, i32
  }
  func.func @transform_4(%arg0: i32) -> i32 {
    %c0_i32 = arith.constant 0 : i32
    %c0_i32_0 = arith.constant 0 : i32
    return %c0_i32 : i32
  }
  func.func @transform_5(%arg0: i32) -> (i32, i32) {
    %c0_i32 = arith.constant 0 : i32
    %c0_i32_0 = arith.constant 0 : i32
    %c0_i32_1 = arith.constant 0 : i32
    return %c0_i32, %c0_i32_0 : i32, i32
  }
  func.func @transform_6(%arg0: i32) -> i32 {
    %c0_i32 = arith.constant 0 : i32
    %c0_i32_0 = arith.constant 0 : i32
    return %c0_i32 : i32
  }
  func.func @transform_7(%arg0: i32) -> (i32, i32) {
    %c0_i32 = arith.constant 0 : i32
    %c0_i32_0 = arith.constant 0 : i32
    return %arg0, %c0_i32 : i32, i32
  }
}

</mosaic_0001>

<bundles_post_ra>
// kernel: tpu_custom_call.1
= control target key start
LH: loop header
LB: loop body
LE: loop exit
PB: predicated region body
PF: predicated region fallthrough
CT: control target
= control target key end

     0   :  { %13 = vsyncpa [#allocation5], 0  ;;  %s479_s0 = inlined_call_operand.vmem [shape: f32[3,128], index: 0, kind: input, shape index: {}]   ;;  %s480_s1 = inlined_call_operand.vmem [shape: f32[3,128], index: 1, kind: input, shape index: {}]   ;;  %s481_s2 = inlined_call_operand.vmem [shape: f32[3,128], index: 2, kind: input, shape index: {}]   ;;  %s482_s3 = inlined_call_operand.vmem [shape: f32[3,8], index: 3, kind: input, shape index: {}]   ;;  %s483_s4 = inlined_call_operand.vmem [shape: f32[8], index: 4, kind: input, shape index: {}]   ;;  %s484_s5 = inlined_call_operand.vmem [shape: f32[8,1], index: 5, kind: input, shape index: {}]   ;;  %s485_s6 = inlined_call_operand.<no memory space> [shape: f32[1], index: 6, kind: input, shape index: {}]   ;;  %s486_s7 = inlined_call_operand.hbm [shape: f32[3,128], index: 7, kind: output, shape index: {}]  }
   0x1   :  { %14 = vsyncpa [#allocation7], 0  ;;  %s38_s26 = sshll.u32 %s483_s4, 4  ;;  %s39_s26 = int_to_ptr.vmem [resolvable:$true] %s38_s26 }
   0x2   :  { %15 = vsyncpa [#allocation4], 0  ;;  %s28_s29 = sshll.u32 %s482_s3, 4  ;;  %s280_s30 = scalar_lea.vmem %s39_s26, 16  ;;  %s29_s29 = int_to_ptr.vmem [resolvable:$true] %s28_s29 }
   0x3   :  { %p281_p0 = scmp.ne.s32.totalorder %s39_s26, %s280_s30  ;;  %p285_p1 = scmp.lt.s32.totalorder %s39_s26, %s39_s26 }
   0x4   :  { %p286_p2 = scmp.lt.s32.totalorder %s280_s30, %s280_s30 }
   0x6   :  { %p287_p3 = por %p286_p2, %p285_p1 }
   0x8   :  { %p288_p4 = pnand %p287_p3, %p281_p0 }
   0xa   :  { %291 = shalt.err (!%p288_p4)
}
   0xb   :  { %s342_s8 = smov [#allocation6]   ;;  %s292_s9 = scalar_lea.vmem %s29_s29, 64 }
   0xc   :  { %41 = dma.vmem_to_smem %s39_s26, 16, %s342_s8, [#allocation7]  }
   0xd   :  { %p293_p5 = scmp.ne.s32.totalorder %s29_s29, %s292_s9  ;;  %p297_p6 = scmp.lt.s32.totalorder %s29_s29, %s29_s29 }
   0xe   :  { %p298_p7 = scmp.lt.s32.totalorder %s292_s9, %s292_s9 }
  0x10   :  { %p299_p8 = por %p298_p7, %p297_p6 }
  0x12   :  { %p300_p9 = pnand %p299_p8, %p293_p5 }
  0x14   :  { %303 = shalt.err (!%p300_p9)
}
  0x15   :  { %s343_s4 = smov [#allocation3]   ;;  %s48_s11 = sshll.u32 %s484_s5, 4  ;;  %s49_s11 = int_to_ptr.vmem [resolvable:$true] %s48_s11 }
  0x16   :  { %31 = dma.vmem_to_smem %s29_s29, 64, %s343_s4, [#allocation5]  }
  0x17   :  { %s304_s12 = scalar_lea.vmem %s49_s11, 128  ;;  %p309_p11 = scmp.lt.s32.totalorder %s49_s11, %s49_s11 }
  0x18   :  { %p305_p10 = scmp.ne.s32.totalorder %s49_s11, %s304_s12  ;;  %p310_p12 = scmp.lt.s32.totalorder %s304_s12, %s304_s12 }
  0x1a   :  { %p311_p13 = por %p310_p12, %p309_p11 }
  0x1c   :  { %p312_p0 = pnand %p311_p13, %p305_p10 }
  0x1e   :  { %315 = shalt.err (!%p312_p0)
}
  0x1f   :  { %s344_s13 = smov [#allocation8]  }
  0x20   :  { %51 = dma.vmem_to_smem %s49_s11, 128, %s344_s13, [#allocation7]  }
  0x21   :  { %336 = dma.done.wait [#allocation5], 64  }
  0x22   :  { %337 = vsyncadd [#allocation5], 4294967232 }
  0x23   :  { %338 = dma.done.wait [#allocation7], 144  }
  0x24   :  { %339 = vsyncadd [#allocation7], 4294967152 }
  0x25   :  { %63 = sfence }
  0x26   :  { %s67_s14 = sld [smem:[#allocation3]]  ;;  %v400_v0 = vld [vmem:[%s479_s0] sm:$0x7] }
  0x27   :  { %s239_s15 = sld [smem:[#allocation3 + $0x80]]  ;;  %v407_v1 = vld [vmem:[%s480_s1] sm:$0x7] }
  0x28   :  { %s240_s16 = sld [smem:[#allocation3 + $0x100]]  ;;  %v412_v2 = vld [vmem:[%s481_s2] sm:$0x7] }
  0x29   :  { %s395_s17 = sld [smem:[#allocation6]] }
  0x2a   :  { %s402_s19 = sld [smem:[#allocation8]] }
  0x2b   :  { %s241_s22 = sld [smem:[#allocation3 + $0x1]] }
  0x2c   :  { %v68_v3 = vstv %s67_s14  ;;  %s242_s25 = sld [smem:[#allocation3 + $0x81]] }
  0x2d   :  { %v69_v4 = vmul.f32 %v68_v3, %v400_v0  ;;  %v71_v5 = vstv %s239_s15  ;;  %s243_s0 = sld [smem:[#allocation3 + $0x101]] }
  0x2e   :  { %v72_v6 = vmul.f32 %v71_v5, %v407_v1  ;;  %v75_v7 = vstv %s240_s16  ;;  %s244_s26 = sld [smem:[#allocation6 + $0x1]] }
  0x2f   :  { %v76_v8 = vmul.f32 %v75_v7, %v412_v2  ;;  %s417_s1 = sld [smem:[#allocation8 + $0x80]]  ;;  %v79_v16 = vstv %s395_s17 }
  0x30   :  { %v73_v9 = vadd.f32 %v72_v6, %v69_v4  ;;  %s246_s27 = sld [smem:[#allocation3 + $0x2]]  ;;  %v83_v37 = vstv %s402_s19 }
  0x31   :  { %v87_v10 = vstv %s241_s22  ;;  %s247_s2 = sld [smem:[#allocation3 + $0x82]] }
  0x32   :  { %v88_v11 = vmul.f32 %v87_v10, %v400_v0  ;;  %v90_v12 = vstv %s242_s25  ;;  %s248_s28 = sld [smem:[#allocation3 + $0x102]]  ;;  %v77_v13 = vadd.f32 %v76_v8, %v73_v9 }
  0x33   :  { %v91_v14 = vmul.f32 %v90_v12, %v407_v1  ;;  %v94_v15 = vstv %s243_s0  ;;  %s421_s29 = sld [smem:[#allocation6 + $0x2]] }
  0x34   :  { %v95_v17 = vmul.f32 %v94_v15, %v412_v2  ;;  %s425_s30 = sld [smem:[#allocation8 + $0x100]]  ;;  %v98_v19 = vstv %s244_s26  ;;  %v80_v21 = vadd.f32 %v79_v16, %v77_v13 }
  0x35   :  { %v92_v18 = vadd.f32 %v91_v14, %v88_v11  ;;  %s251_s8 = sld [smem:[#allocation3 + $0x3]]  ;;  %v102_v38 = vstv %s417_s1 }
  0x36   :  { %v106_v20 = vstv %s246_s27  ;;  %s252_s9 = sld [smem:[#allocation3 + $0x83]]  ;;  %v81_v30 = vmax.f32 %v80_v21, 0.0 }
  0x37   :  { %v96_v22 = vadd.f32 %v95_v17, %v92_v18  ;;  %v107_v23 = vmul.f32 %v106_v20, %v400_v0  ;;  %v109_v24 = vstv %s247_s2  ;;  %s253_s4 = sld [smem:[#allocation3 + $0x103]] }
  0x38   :  { %v110_v25 = vmul.f32 %v109_v24, %v407_v1  ;;  %v113_v26 = vstv %s248_s28  ;;  %s429_s3 = sld [smem:[#allocation6 + $0x3]]  ;;  %v84_v44 = vmul.f32 %v83_v37, %v81_v30 }
  0x39   :  { %v99_v27 = vadd.f32 %v98_v19, %v96_v22  ;;  %v114_v28 = vmul.f32 %v113_v26, %v412_v2  ;;  %s432_s10 = sld [smem:[#allocation8 + $0x180]]  ;;  %v117_v31 = vstv %s421_s29  ;;  %s345_s29 = smov [#allocation9]  }
  0x3a   :  { %v111_v29 = vadd.f32 %v110_v25, %v107_v23  ;;  %s256_s11 = sld [smem:[#allocation3 + $0x4]]  ;;  %v121_v52 = vstv %s425_s30  ;;  %s229_s30 = sshll.u32 %s345_s29, 4  ;;  %s230_s30 = int_to_ptr.vmem [resolvable:$true] %s229_s30 }
  0x3b   :  { %v125_v32 = vstv %s251_s8  ;;  %s257_s12 = sld [smem:[#allocation3 + $0x84]]  ;;  %v100_v33 = vmax.f32 %v99_v27, 0.0  ;;  %s316_s8 = scalar_lea.vmem %s230_s30, 64 }
  0x3c   :  { %v115_v34 = vadd.f32 %v114_v28, %v111_v29  ;;  %v126_v35 = vmul.f32 %v125_v32, %v400_v0  ;;  %v128_v36 = vstv %s252_s9  ;;  %s258_s13 = sld [smem:[#allocation3 + $0x104]]  ;;  %p317_p1 = scmp.ne.s32.totalorder %s230_s30, %s316_s8 }
  0x3d   :  { %v129_v39 = vmul.f32 %v128_v36, %v407_v1  ;;  %v132_v40 = vstv %s253_s4  ;;  %s439_s14 = sld [smem:[#allocation6 + $0x4]]  ;;  %v103_v45 = vmul.f32 %v102_v38, %v100_v33  ;;  %p321_p2 = scmp.lt.s32.totalorder %s230_s30, %s230_s30 }
  0x3e   :  { %v118_v41 = vadd.f32 %v117_v31, %v115_v34  ;;  %v133_v42 = vmul.f32 %v132_v40, %v412_v2  ;;  %s442_s15 = sld [smem:[#allocation8 + $0x200]]  ;;  %v136_v46 = vstv %s429_s3  ;;  %p322_p3 = scmp.lt.s32.totalorder %s316_s8, %s316_s8 }
  0x3f   :  { %v130_v43 = vadd.f32 %v129_v39, %v126_v35  ;;  %s261_s16 = sld [smem:[#allocation3 + $0x5]]  ;;  %v104_v57 = vadd.f32 %v103_v45, %v84_v44  ;;  %v140_v63 = vstv %s432_s10 }
  0x40   :  { %v144_v47 = vstv %s256_s11  ;;  %s262_s17 = sld [smem:[#allocation3 + $0x85]]  ;;  %v119_v48 = vmax.f32 %v118_v41, 0.0  ;;  %p323_p4 = por %p322_p3, %p321_p2 }
  0x41   :  { %v134_v49 = vadd.f32 %v133_v42, %v130_v43  ;;  %v145_v50 = vmul.f32 %v144_v47, %v400_v0  ;;  %v147_v51 = vstv %s257_s12  ;;  %s263_s5 = sld [smem:[#allocation3 + $0x105]] }
  0x42   :  { %v148_v53 = vmul.f32 %v147_v51, %v407_v1  ;;  %v151_v54 = vstv %s258_s13  ;;  %s448_s18 = sld [smem:[#allocation6 + $0x5]]  ;;  %v122_v59 = vmul.f32 %v121_v52, %v119_v48  ;;  %p324_p5 = pnand %p323_p4, %p317_p1 }
  0x43   :  { %v137_v55 = vadd.f32 %v136_v46, %v134_v49  ;;  %v152_v56 = vmul.f32 %v151_v54, %v412_v2  ;;  %s451_s19 = sld [smem:[#allocation8 + $0x280]]  ;;  %v155_v61 = vstv %s439_s14 }
  0x44   :  { %v149_v58 = vadd.f32 %v148_v53, %v145_v50  ;;  %s266_s20 = sld [smem:[#allocation3 + $0x6]]  ;;  %v123_v10 = vadd.f32 %v122_v59, %v104_v57  ;;  %v159_v14 = vstv %s442_s15 }
  0x45   :  { %v138_v60 = vmax.f32 %v137_v55, 0.0  ;;  %v163_v62 = vstv %s261_s16  ;;  %s267_s21 = sld [smem:[#allocation3 + $0x86]] }
  0x46   :  { %v153_v3 = vadd.f32 %v152_v56, %v149_v58  ;;  %v164_v4 = vmul.f32 %v163_v62, %v400_v0  ;;  %v166_v5 = vstv %s262_s17  ;;  %s268_s22 = sld [smem:[#allocation3 + $0x106]] }
  0x47   :  { %v167_v6 = vmul.f32 %v166_v5, %v407_v1  ;;  %v170_v7 = vstv %s263_s5  ;;  %s457_s23 = sld [smem:[#allocation6 + $0x6]]  ;;  %v141_v11 = vmul.f32 %v140_v63, %v138_v60 }
  0x48   :  { %v156_v8 = vadd.f32 %v155_v61, %v153_v3  ;;  %v171_v9 = vmul.f32 %v170_v7, %v412_v2  ;;  %s460_s24 = sld [smem:[#allocation8 + $0x300]]  ;;  %v174_v15 = vstv %s448_s18 }
  0x49   :  { %v168_v12 = vadd.f32 %v167_v6, %v164_v4  ;;  %s271_s25 = sld [smem:[#allocation3 + $0x7]]  ;;  %v142_v22 = vadd.f32 %v141_v11, %v123_v10  ;;  %v178_v26 = vstv %s451_s19 }
  0x4a   :  { %v157_v13 = vmax.f32 %v156_v8, 0.0  ;;  %v182_v16 = vstv %s266_s20  ;;  %s272_s0 = sld [smem:[#allocation3 + $0x87]] }
  0x4b   :  { %v172_v17 = vadd.f32 %v171_v9, %v168_v12  ;;  %v183_v18 = vmul.f32 %v182_v16, %v400_v0  ;;  %v185_v19 = vstv %s267_s21  ;;  %s273_s26 = sld [smem:[#allocation3 + $0x107]] }
  0x4c   :  { %v186_v20 = vmul.f32 %v185_v19, %v407_v1  ;;  %v189_v21 = vstv %s268_s22  ;;  %s274_s1 = sld [smem:[#allocation6 + $0x7]]  ;;  %v160_v23 = vmul.f32 %v159_v14, %v157_v13 }
  0x4d   :  { %v175_v24 = vadd.f32 %v174_v15, %v172_v17  ;;  %v190_v25 = vmul.f32 %v189_v21, %v412_v2  ;;  %v193_v29 = vstv %s457_s23  ;;  %s275_s27 = sld [smem:[#allocation8 + $0x380]] }
  0x4e   :  { %v187_v27 = vadd.f32 %v186_v20, %v183_v18  ;;  %v161_v34 = vadd.f32 %v160_v23, %v142_v22  ;;  %v197_v40 = vstv %s460_s24 }
  0x4f   :  { %v176_v28 = vmax.f32 %v175_v24, 0.0  ;;  %v201_v30 = vstv %s271_s25 }
  0x50   :  { %v191_v31 = vadd.f32 %v190_v25, %v187_v27  ;;  %v202_v32 = vmul.f32 %v201_v30, %v400_v0  ;;  %v204_v33 = vstv %s272_s0 }
  0x51   :  { %v179_v35 = vmul.f32 %v178_v26, %v176_v28  ;;  %v205_v36 = vmul.f32 %v204_v33, %v407_v1  ;;  %v208_v37 = vstv %s273_s26  ;;  %v220_v1 = vstv %s485_s6 }
  0x52   :  { %v194_v38 = vadd.f32 %v193_v29, %v191_v31  ;;  %v209_v39 = vmul.f32 %v208_v37, %v412_v2  ;;  %v212_v43 = vstv %s274_s1 }
  0x53   :  { %v206_v41 = vadd.f32 %v205_v36, %v202_v32  ;;  %v180_v44 = vadd.f32 %v179_v35, %v161_v34  ;;  %v216_v48 = vstv %s275_s27 }
  0x54   :  { %v195_v42 = vmax.f32 %v194_v38, 0.0 }
  0x55   :  { %v210_v45 = vadd.f32 %v209_v39, %v206_v41 }
  0x56   :  { %v198_v46 = vmul.f32 %v197_v40, %v195_v42 }
  0x57   :  { %v213_v47 = vadd.f32 %v212_v43, %v210_v45 }
  0x58   :  { %v199_v0 = vadd.f32 %v198_v46, %v180_v44 }
  0x59   :  { %v214_v49 = vmax.f32 %v213_v47, 0.0 }
  0x5b   :  { %v217_v50 = vmul.f32 %v216_v48, %v214_v49 }
  0x5d   :  { %v218_v51 = vadd.f32 %v217_v50, %v199_v0 }
  0x5f   :  { %v221_v2 = vadd.f32 %v220_v1, %v218_v51 }
  0x61   :  { %222 = vst [vmem:[#allocation9] sm:$0x7] %v221_v2 }
  0x62   :  { %327 = shalt.err (!%p324_p5)
}
  0x63   :  { %232 = dma.vmem_to_hbm [thread:$0]  %s230_s30, 64, %s486_s7, [#allocation4]  }
  0x64   :  { %340 = dma.done.wait [#allocation4], 64  }
  0x65   :  { %341 = vsyncadd [#allocation4], 4294967232 }
  0x66   :  { %236 = vsyncpa [#allocation4], 1 }
  0x67   :  { %237 = vsyncpa [#allocation5], 1 }
  0x68   :  { %238 = vsyncpa [#allocation7], 1 }

</bundles_post_ra>
